<compile_context>
chip_gen: v5e
topology: v5e:2x2
jax: 0.10.0
libtpu: 0.0.40
codegen_flags: <defaults>
</compile_context>

<pallas_src>
import random

import jax
import jax.numpy as jnp
from jax import lax
from jax.experimental import pallas as pl
from jax.experimental.pallas import tpu as pltpu

UNK_ID = 1


def _vmem_limit_bytes():
    # Generation-aware scoped-VMEM budget: ~48 MiB on v7x (64 MiB physical),
    # ~100 MiB on v5e/v6e (128 MiB physical).
    try:
        kind = jax.devices()[0].device_kind.lower()
    except Exception:
        kind = ""
    if "v7" in kind:
        return 48 * 1024 * 1024
    return 100 * 1024 * 1024


def _const_spec(shape):
    """Full-array block whose index_map is constant -> DMA'd once, VMEM-resident."""
    nd = len(shape)
    return pl.BlockSpec(shape, lambda *args, nd=nd: (0,) * nd)


def replace_oovs(tokens, vocab_size):
    # tokens >= vocab_size  ->  UNK
    return jnp.where(tokens >= vocab_size, jnp.full_like(tokens, UNK_ID), tokens)


# --------------------------------------------------------------------------
# Pallas kernel 1: fused bidirectional GRU encoder (single launch, full
# recurrence in an in-kernel loop; weights + both hidden states VMEM-resident).
# --------------------------------------------------------------------------
def _bigru_encoder_kernel(emb_ref,
                          wih_f_ref, bih_f_ref, whh_f_ref, bhh_f_ref,
                          wih_b_ref, bih_b_ref, whh_b_ref, bhh_b_ref,
                          out_f_ref, out_b_ref,
                          hf_scr, hb_scr):
    S = emb_ref.shape[0]
    H = whh_f_ref.shape[0]

    hf_scr[...] = jnp.zeros_like(hf_scr)
    hb_scr[...] = jnp.zeros_like(hb_scr)

    def gru_step(x, h, wih, bih, whh, bhh):
        gi = jnp.dot(x, wih, preferred_element_type=jnp.float32) + bih
        gh = jnp.dot(h, whh, preferred_element_type=jnp.float32) + bhh
        r = jax.nn.sigmoid(gi[:, :H] + gh[:, :H])
        z = jax.nn.sigmoid(gi[:, H:2 * H] + gh[:, H:2 * H])
        n = jnp.tanh(gi[:, 2 * H:] + r * gh[:, 2 * H:])
        return (1.0 - z) * n + z * h

    def step(t, carry):
        hf = gru_step(emb_ref[t], hf_scr[...],
                      wih_f_ref[...], bih_f_ref[...], whh_f_ref[...], bhh_f_ref[...])
        hb = gru_step(emb_ref[S - 1 - t], hb_scr[...],
                      wih_b_ref[...], bih_b_ref[...], whh_b_ref[...], bhh_b_ref[...])
        hf_scr[...] = hf
        hb_scr[...] = hb
        out_f_ref[t] = hf
        out_b_ref[S - 1 - t] = hb
        return carry

    lax.fori_loop(0, S, step, 0)


def pallas_bigru_encoder(emb_src,
                         wih_f, bih_f, whh_f, bhh_f,
                         wih_b, bih_b, whh_b, bhh_b):
    S, B, E = emb_src.shape
    H = whh_f.shape[0]
    tensors = [emb_src, wih_f, bih_f, whh_f, bhh_f, wih_b, bih_b, whh_b, bhh_b]
    grid_spec = pltpu.PrefetchScalarGridSpec(
        num_scalar_prefetch=0,
        grid=(1,),
        in_specs=[_const_spec(t.shape) for t in tensors],
        out_specs=[_const_spec((S, B, H)), _const_spec((S, B, H))],
        scratch_shapes=[pltpu.VMEM((B, H), jnp.float32),
                        pltpu.VMEM((B, H), jnp.float32)],
    )
    return pl.pallas_call(
        _bigru_encoder_kernel,
        out_shape=(jax.ShapeDtypeStruct((S, B, H), jnp.float32),
                   jax.ShapeDtypeStruct((S, B, H), jnp.float32)),
        grid_spec=grid_spec,
        compiler_params=pltpu.CompilerParams(
            dimension_semantics=("arbitrary",),
            vmem_limit_bytes=_vmem_limit_bytes()),
    )(*tensors)


# --------------------------------------------------------------------------
# Pallas kernel 2: fused decoder (single launch).  Prologue: loop-invariant
# encoder attention features.  Per step (in-kernel loop): additive attention,
# VPU-reduced context/copy distributions, GRU cell, vocab softmax + p_gen,
# pointer/copy mixture, gated argmax-feedback embedding.
# --------------------------------------------------------------------------
def _decoder_kernel(flags_ref,                                  # scalar prefetch (SMEM)
                    tf_emb_ref, h0_ref, enc_ref, mask_ref, r2t_ref,
                    wenc_ref, wdec_ref, v_ref,
                    wih_e_ref, wih_c_ref, whh_ref, bih_ref, bhh_ref,
                    woh_ref, woc_ref, bo_ref,
                    wgh_ref, wgc_ref, bg_ref,
                    emb_tgt_ref,
                    out_ref,
                    h_scr, prev_emb_scr, encfeat_scr):
    B, S, D = enc_ref.shape
    V = emb_tgt_ref.shape[0]
    VP = woh_ref.shape[-1]
    Tm1 = out_ref.shape[0]

    # ---- loop-invariant prologue: encoder-side attention projection --------
    # TODO(synk): at production B*S, compute this as one tiled (B*S,D)@(D,A) matmul.
    for b in range(B):
        encfeat_scr[b] = jnp.dot(enc_ref[b], wenc_ref[...],
                                 preferred_element_type=jnp.float32)

    h_scr[...] = h0_ref[...]
    prev_emb_scr[...] = jnp.zeros_like(prev_emb_scr)

    def step(s, carry):
        h = h_scr[...]                                           # (B, D)

        # --- decoder input: teacher-forced embedding vs. previous argmax emb
        use_tf = flags_ref[s] == 1
        emb_in = jnp.where(use_tf, tf_emb_ref[s], prev_emb_scr[...])   # (B, E)

        # --- additive attention (enc projection hoisted to prologue)
        mask = mask_ref[...]                                     # (B, S)
        df = jnp.dot(h, wdec_ref[...], preferred_element_type=jnp.float32)   # (B, A)
        feat = jnp.tanh(encfeat_scr[...] + df[:, None, :])       # (B, S, A)
        scores = jnp.sum(feat * v_ref[...][None, :, :], axis=-1)  # (B, S)
        scores = jnp.where(mask > 0, scores, -1e30)
        scores = scores - jnp.max(scores, axis=-1, keepdims=True)
        e = jnp.exp(scores) * mask
        attn = e * pl.reciprocal(jnp.sum(e, axis=-1, keepdims=True) + 1e-12,
                                 approx=True)                    # (B, S)

        # --- context + copy distribution: VPU weighted reductions over S
        ctx = jnp.sum(attn[:, :, None] * enc_ref[...], axis=1)   # (B, D)
        col3 = lax.broadcasted_iota(jnp.int32, (B, S, VP), 2)
        copy_dist = jnp.sum(
            jnp.where(r2t_ref[...][:, :, None] == col3, attn[:, :, None], 0.0),
            axis=1)                                              # (B, VP)
        # TODO(synk): chunk the copy scatter over S for long sequences.

        # --- decoder GRU cell (W_ih split into emb / ctx blocks, no concat)
        gi = (jnp.dot(emb_in, wih_e_ref[...], preferred_element_type=jnp.float32)
              + jnp.dot(ctx, wih_c_ref[...], preferred_element_type=jnp.float32)
              + bih_ref[...])
        gh = jnp.dot(h, whh_ref[...], preferred_element_type=jnp.float32) + bhh_ref[...]
        r = jax.nn.sigmoid(gi[:, :D] + gh[:, :D])
        z = jax.nn.sigmoid(gi[:, D:2 * D] + gh[:, D:2 * D])
        n = jnp.tanh(gi[:, 2 * D:] + r * gh[:, 2 * D:])
        h_new = (1.0 - z) * n + z * h
        h_scr[...] = h_new

        # --- vocab distribution over lane-padded width VP (cols >= V masked)
        logits = (jnp.dot(h_new, woh_ref[...], preferred_element_type=jnp.float32)
                  + jnp.dot(ctx, woc_ref[...], preferred_element_type=jnp.float32)
                  + bo_ref[...])
        col = lax.broadcasted_iota(jnp.int32, (B, VP), 1)
        logits = jnp.where(col < V, logits, -1e30)
        logits = logits - jnp.max(logits, axis=-1, keepdims=True)
        ex = jnp.exp(logits)
        p_vocab = ex * pl.reciprocal(jnp.sum(ex, axis=-1, keepdims=True),
                                     approx=True)                # (B, VP)

        g = (jnp.dot(h_new, wgh_ref[...], preferred_element_type=jnp.float32)
             + jnp.dot(ctx, wgc_ref[...], preferred_element_type=jnp.float32)
             + bg_ref[...])
        p_gen = jax.nn.sigmoid(g)                                # (B, 1)

        final = p_gen * p_vocab + (1.0 - p_gen) * copy_dist      # (B, VP)
        out_ref[s] = final

        # --- argmax feedback only if the NEXT step is NOT teacher-forced
        @pl.when(flags_ref[s + 1] == 0)
        def _():
            m = jnp.max(final, axis=-1, keepdims=True)
            idx = jnp.min(jnp.where(final >= m, col, VP), axis=-1, keepdims=True)
            idx = jnp.where(idx >= V, UNK_ID, idx)               # replace_oovs(tgt)
            oh = (idx == lax.broadcasted_iota(jnp.int32, (B, V), 1)).astype(jnp.float32)
            prev_emb_scr[...] = jnp.dot(oh, emb_tgt_ref[...],
                                        preferred_element_type=jnp.float32)

        return carry

    lax.fori_loop(0, Tm1, step, 0)


def pallas_decoder(tf_flags, tf_emb, h0, enc_out, x_mask, ref2tgt,
                   attn_wenc, attn_wdec, attn_v,
                   dec_wih_e, dec_wih_c, dec_whh, dec_bih, dec_bhh,
                   out_wh_p, out_wc_p, out_b_p,
                   gen_wh, gen_wc, gen_b,
                   emb_tgt):
    Tm1, B, E = tf_emb.shape
    _, S, D = enc_out.shape
    A = attn_wenc.shape[1]
    VP = out_wh_p.shape[-1]
    tensors = [tf_emb, h0, enc_out, x_mask, ref2tgt,
               attn_wenc, attn_wdec, attn_v,
               dec_wih_e, dec_wih_c, dec_whh, dec_bih, dec_bhh,
               out_wh_p, out_wc_p, out_b_p,
               gen_wh, gen_wc, gen_b, emb_tgt]
    grid_spec = pltpu.PrefetchScalarGridSpec(
        num_scalar_prefetch=1,
        grid=(1,),
        in_specs=[_const_spec(t.shape) for t in tensors],
        out_specs=_const_spec((Tm1, B, VP)),
        scratch_shapes=[pltpu.VMEM((B, D), jnp.float32),           # hidden state
                        pltpu.VMEM((B, E), jnp.float32),           # prev argmax emb
                        pltpu.VMEM((B, S, A), jnp.float32)],       # enc attn features
    )
    return pl.pallas_call(
        _decoder_kernel,
        out_shape=jax.ShapeDtypeStruct((Tm1, B, VP), jnp.float32),
        grid_spec=grid_spec,
        compiler_params=pltpu.CompilerParams(
            dimension_semantics=("arbitrary",),
            vmem_limit_bytes=_vmem_limit_bytes()),
    )(tf_flags, *tensors)


# --------------------------------------------------------------------------
# parameter init (deterministic, synthetic)
# --------------------------------------------------------------------------
def _init(key, shape, scale=0.1):
    return scale * jax.random.normal(key, shape, dtype=jnp.float32)


def init_params(key, V, E, H, A):
    ks = iter(jax.random.split(key, 24))
    D = 2 * H
    p = {}
    p['emb_ref'] = _init(next(ks), (V, E))
    p['emb_tgt'] = _init(next(ks), (V, E))
    for d in ('fwd', 'bwd'):
        p[f'enc_{d}_wih'] = _init(next(ks), (E, 3 * H))
        p[f'enc_{d}_whh'] = _init(next(ks), (H, 3 * H))
        p[f'enc_{d}_bih'] = _init(next(ks), (1, 3 * H))
        p[f'enc_{d}_bhh'] = _init(next(ks), (1, 3 * H))
    p['attn_wenc'] = _init(next(ks), (D, A))
    p['attn_wdec'] = _init(next(ks), (D, A))
    p['attn_v'] = _init(next(ks), (1, A))
    p['dec_wih'] = _init(next(ks), (E + D, 3 * D))
    p['dec_whh'] = _init(next(ks), (D, 3 * D))
    p['dec_bih'] = _init(next(ks), (1, 3 * D))
    p['dec_bhh'] = _init(next(ks), (1, 3 * D))
    p['out_wh'] = _init(next(ks), (D, V))
    p['out_wc'] = _init(next(ks), (D, V))
    p['out_b'] = _init(next(ks), (1, V))
    p['gen_wh'] = _init(next(ks), (D, 1))
    p['gen_wc'] = _init(next(ks), (D, 1))
    p['gen_b'] = _init(next(ks), (1, 1))
    return p


# --------------------------------------------------------------------------
# Seq2Seq.forward
# --------------------------------------------------------------------------
def seq2seq_forward(params, ref, tgt, len_oov, ref2tgt, teacher_forcing_ratio,
                    max_oov):
    # TODO(synk): max_oov is a static extended-vocab width; len_oov kept for
    # interface fidelity only (must satisfy max(len_oov) <= max_oov).
    V, E = params['emb_tgt'].shape
    H = params['enc_fwd_whh'].shape[0]
    D = 2 * H
    B, S = ref.shape
    _, T = tgt.shape
    Vext = V + max_oov
    VP = ((Vext + 127) // 128) * 128          # lane-dense (128-multiple) output width

    # ---- encoder -----------------------------------------------------------
    inp = replace_oovs(ref, V)                                   # replace_oovs(input, ref_dict)
    emb_src = jnp.transpose(params['emb_ref'][inp], (1, 0, 2))   # (S, B, E) gather (glue)

    out_f, out_b = pallas_bigru_encoder(
        emb_src,
        params['enc_fwd_wih'], params['enc_fwd_bih'],
        params['enc_fwd_whh'], params['enc_fwd_bhh'],
        params['enc_bwd_wih'], params['enc_bwd_bih'],
        params['enc_bwd_whh'], params['enc_bwd_bhh'])            # each (S, B, H)

    enc_out = jnp.transpose(jnp.concatenate([out_f, out_b], axis=-1), (1, 0, 2))  # (B,S,D)
    h0 = jnp.concatenate([out_f[S - 1], out_b[0]], axis=-1)      # (B, D)  == cat(fwd,bwd)
    x_mask = (inp != 0).astype(jnp.float32)                      # (B, S)

    # ---- decoder (single fused kernel over all T-1 steps) ------------------
    # TODO(synk): teacher-forcing decisions are drawn with Python random at trace
    # time (identical every call); exact at ratio=1.0, approximate otherwise.
    random.seed(0)
    draws = [random.random() <= teacher_forcing_ratio for _ in range(T - 1)]
    # flags[s]: step s uses the teacher-forced token; trailing 1 so the in-kernel
    # "next step" lookup at the last step never reads OOB and skips feedback.
    use_tf = [1] + [int(draws[s - 1]) for s in range(1, T - 1)] + [1]
    tf_flags = jnp.asarray(use_tf, dtype=jnp.int32)              # (T,)

    tok_tf = replace_oovs(tgt[:, :T - 1], V)                     # (B, T-1)
    tf_emb = jnp.transpose(params['emb_tgt'][tok_tf], (1, 0, 2))  # (T-1, B, E)

    pad = VP - V
    out_wh_p = jnp.pad(params['out_wh'], ((0, 0), (0, pad)))
    out_wc_p = jnp.pad(params['out_wc'], ((0, 0), (0, pad)))
    out_b_p = jnp.pad(params['out_b'], ((0, 0), (0, pad)))

    # split decoder input weights into embedding / context blocks (no in-kernel concat)
    dec_wih_e = params['dec_wih'][:E]                            # (E, 3D)
    dec_wih_c = params['dec_wih'][E:]                            # (D, 3D)

    # TODO(synk): coverage disabled (decoder.coverage == False); coverage loss not exercised.
    out_steps = pallas_decoder(
        tf_flags, tf_emb, h0, enc_out, x_mask, ref2tgt.astype(jnp.int32),
        params['attn_wenc'], params['attn_wdec'], params['attn_v'],
        dec_wih_e, dec_wih_c,
        params['dec_whh'], params['dec_bih'], params['dec_bhh'],
        out_wh_p, out_wc_p, out_b_p,
        params['gen_wh'], params['gen_wc'], params['gen_b'],
        params['emb_tgt'])                                        # (T-1, B, VP)

    # ---- loss / preds bookkeeping (glue) ------------------------------------
    out_bt = jnp.transpose(out_steps, (1, 0, 2))[:, :, :Vext]    # (B, T-1, Vext)
    outputs = jnp.concatenate(
        [jnp.zeros((B, 1, Vext), jnp.float32), out_bt], axis=1)  # (B, T, Vext)
    preds = jnp.argmax(out_bt, axis=-1).astype(jnp.int32)        # (B, T-1)

    tgt_rest = tgt[:, 1:]
    target_probs = jnp.take_along_axis(out_bt, tgt_rest[:, :, None], axis=-1)[..., 0]
    step_mask = (tgt_rest != 0).astype(jnp.float32)
    step_losses = -jnp.log(target_probs + 1e-31) * step_mask
    sample_losses = jnp.sum(step_losses, axis=1)
    batch_seq_len = jnp.sum((tgt != 0).astype(jnp.float32), axis=1)
    batch_loss = jnp.mean(sample_losses / batch_seq_len)
    return outputs, preds, batch_loss


# --------------------------------------------------------------------------
if __name__ == "__main__":
    B, S_ref, T_tgt = 2, 8, 8
    V, E, H, A = 32, 16, 16, 16                  # tgt vocab, embed, enc hidden, attn dim
    MAX_OOV = 3                                  # static extended-vocab width
    key = jax.random.PRNGKey(0)
    k_p, k_ref, k_tgt = jax.random.split(key, 3)

    params = init_params(k_p, V, E, H, A)

    len_oov = jnp.array([2, 3], dtype=jnp.int32)
    ref = jax.random.randint(k_ref, (B, S_ref), 1, V + MAX_OOV, dtype=jnp.int32)
    ref = ref.at[:, -2:].set(0)                  # padding positions
    tgt = jax.random.randint(k_tgt, (B, T_tgt), 1, V, dtype=jnp.int32)
    tgt = tgt.at[:, 0].set(2)                    # BOS
    tgt = tgt.at[:, -1].set(0)                   # padding
    ref2tgt = jnp.where(ref >= V, V + (ref - V) % MAX_OOV, ref).astype(jnp.int32)

    outputs, preds, batch_loss = seq2seq_forward(
        params, ref, tgt, len_oov, ref2tgt,
        teacher_forcing_ratio=1.0, max_oov=MAX_OOV)
    jax.block_until_ready((outputs, preds, batch_loss))

    assert outputs.shape == (B, T_tgt, V + MAX_OOV)
    assert preds.shape == (B, T_tgt - 1)
    assert batch_loss.shape == ()
    print("KERNEL_OK")
</pallas_src>

<mosaic_0001>
module attributes {stable_mosaic.version = 11 : i64} {
  func.func @_bigru_encoder_kernel(%arg0: i32, %arg1: memref<8x2x16xf32, #tpu.memory_space<vmem>>, %arg2: memref<16x48xf32, #tpu.memory_space<vmem>>, %arg3: memref<1x48xf32, #tpu.memory_space<vmem>>, %arg4: memref<16x48xf32, #tpu.memory_space<vmem>>, %arg5: memref<1x48xf32, #tpu.memory_space<vmem>>, %arg6: memref<16x48xf32, #tpu.memory_space<vmem>>, %arg7: memref<1x48xf32, #tpu.memory_space<vmem>>, %arg8: memref<16x48xf32, #tpu.memory_space<vmem>>, %arg9: memref<1x48xf32, #tpu.memory_space<vmem>>, %arg10: memref<8x2x16xf32, #tpu.memory_space<vmem>>, %arg11: memref<8x2x16xf32, #tpu.memory_space<vmem>>, %arg12: memref<2x16xf32, #tpu.memory_space<vmem>>, %arg13: memref<2x16xf32, #tpu.memory_space<vmem>>) attributes {dimension_semantics = [#tpu.dimension_semantics<arbitrary>], iteration_bounds = array<i64: 1>, scalar_prefetch = 0 : i64, scratch_operands = 2 : i64, tpu.core_type = #tpu.core_type<tc>, window_params = [{pipeline_mode = #tpu.pipeline_mode<synchronous>, transform_indices = @transform_0, window_bounds = array<i64: 8, 2, 16>}, {pipeline_mode = #tpu.pipeline_mode<synchronous>, transform_indices = @transform_1, window_bounds = array<i64: 16, 48>}, {pipeline_mode = #tpu.pipeline_mode<synchronous>, transform_indices = @transform_2, window_bounds = array<i64: 1, 48>}, {pipeline_mode = #tpu.pipeline_mode<synchronous>, transform_indices = @transform_3, window_bounds = array<i64: 16, 48>}, {pipeline_mode = #tpu.pipeline_mode<synchronous>, transform_indices = @transform_4, window_bounds = array<i64: 1, 48>}, {pipeline_mode = #tpu.pipeline_mode<synchronous>, transform_indices = @transform_5, window_bounds = array<i64: 16, 48>}, {pipeline_mode = #tpu.pipeline_mode<synchronous>, transform_indices = @transform_6, window_bounds = array<i64: 1, 48>}, {pipeline_mode = #tpu.pipeline_mode<synchronous>, transform_indices = @transform_7, window_bounds = array<i64: 16, 48>}, {pipeline_mode = #tpu.pipeline_mode<synchronous>, transform_indices = @transform_8, window_bounds = array<i64: 1, 48>}, {pipeline_mode = #tpu.pipeline_mode<synchronous>, transform_indices = @transform_9, window_bounds = array<i64: 8, 2, 16>}, {pipeline_mode = #tpu.pipeline_mode<synchronous>, transform_indices = @transform_10, window_bounds = array<i64: 8, 2, 16>}]} {
    %cst = arith.constant 0.000000e+00 : f32
    %0 = vector.broadcast %cst : f32 to vector<2x16xf32>
    %c0 = arith.constant 0 : index
    %c0_0 = arith.constant 0 : index
    %1 = vector.load %arg12[%c0, %c0_0] : memref<2x16xf32, #tpu.memory_space<vmem>>, vector<2x16xf32>
    tpu.vector_store %arg12[%c0, %c0_0], %0 {strides = array<i32>} : memref<2x16xf32, #tpu.memory_space<vmem>>, vector<2x16xf32>,
    %cst_1 = arith.constant 0.000000e+00 : f32
    %2 = vector.broadcast %cst_1 : f32 to vector<2x16xf32>
    %c0_2 = arith.constant 0 : index
    %c0_3 = arith.constant 0 : index
    %3 = vector.load %arg13[%c0_2, %c0_3] : memref<2x16xf32, #tpu.memory_space<vmem>>, vector<2x16xf32>
    tpu.vector_store %arg13[%c0_2, %c0_3], %2 {strides = array<i32>} : memref<2x16xf32, #tpu.memory_space<vmem>>, vector<2x16xf32>,
    %c0_i32 = arith.constant 0 : i32
    %c8_i32 = arith.constant 8 : i32
    %4 = arith.addi %c0_i32, %c8_i32 : i32
    %c1_i32 = arith.constant 1 : i32
    scf.for %arg14 = %c0_i32 to %4 step %c1_i32  : i32 {
      %5 = arith.index_cast %arg14 : i32 to index
      %c0_5 = arith.constant 0 : index
      %c0_6 = arith.constant 0 : index
      %6 = vector.load %arg1[%5, %c0_5, %c0_6] : memref<8x2x16xf32, #tpu.memory_space<vmem>>, vector<1x2x16xf32>
      %7 = vector.shape_cast %6 : vector<1x2x16xf32> to vector<2x16xf32>
      %c0_7 = arith.constant 0 : index
      %c0_8 = arith.constant 0 : index
      %8 = vector.load %arg12[%c0_7, %c0_8] : memref<2x16xf32, #tpu.memory_space<vmem>>, vector<2x16xf32>
      %c0_9 = arith.constant 0 : index
      %c0_10 = arith.constant 0 : index
      %9 = vector.load %arg2[%c0_9, %c0_10] : memref<16x48xf32, #tpu.memory_space<vmem>>, vector<16x48xf32>
      %c0_11 = arith.constant 0 : index
      %c0_12 = arith.constant 0 : index
      %10 = vector.load %arg3[%c0_11, %c0_12] : memref<1x48xf32, #tpu.memory_space<vmem>>, vector<1x48xf32>
      %c0_13 = arith.constant 0 : index
      %c0_14 = arith.constant 0 : index
      %11 = vector.load %arg4[%c0_13, %c0_14] : memref<16x48xf32, #tpu.memory_space<vmem>>, vector<16x48xf32>
      %c0_15 = arith.constant 0 : index
      %c0_16 = arith.constant 0 : index
      %12 = vector.load %arg5[%c0_15, %c0_16] : memref<1x48xf32, #tpu.memory_space<vmem>>, vector<1x48xf32>
      %cst_17 = arith.constant dense<0.000000e+00> : vector<2x48xf32>
      %13 = tpu.matmul %7, %9, %cst_17 {dimension_numbers = #tpu.dot_dimension_numbers<[1], [0], [0], [1], [0, 0, 1, 1], [], []>} : vector<2x16xf32>, vector<16x48xf32>, vector<2x48xf32> -> vector<2x48xf32>
      %14 = vector.broadcast %10 : vector<1x48xf32> to vector<2x48xf32>
      %15 = arith.addf %13, %14 : vector<2x48xf32>
      %cst_18 = arith.constant dense<0.000000e+00> : vector<2x48xf32>
      %16 = tpu.matmul %8, %11, %cst_18 {dimension_numbers = #tpu.dot_dimension_numbers<[1], [0], [0], [1], [0, 0, 1, 1], [], []>} : vector<2x16xf32>, vector<16x48xf32>, vector<2x48xf32> -> vector<2x48xf32>
      %17 = vector.broadcast %12 : vector<1x48xf32> to vector<2x48xf32>
      %18 = arith.addf %16, %17 : vector<2x48xf32>
      %19 = vector.extract_strided_slice %15 {offsets = [0, 0], sizes = [2, 16], strides = [1, 1]} : vector<2x48xf32> to vector<2x16xf32>
      %20 = vector.extract_strided_slice %18 {offsets = [0, 0], sizes = [2, 16], strides = [1, 1]} : vector<2x48xf32> to vector<2x16xf32>
      %21 = arith.addf %19, %20 : vector<2x16xf32>
      %22 = arith.negf %21 : vector<2x16xf32>
      %23 = math.exp %22 : vector<2x16xf32>
      %cst_19 = arith.constant 1.000000e+00 : f32
      %24 = vector.broadcast %cst_19 : f32 to vector<2x16xf32>
      %25 = arith.addf %24, %23 : vector<2x16xf32>
      %26 = arith.divf %24, %25 : vector<2x16xf32>
      %27 = vector.extract_strided_slice %15 {offsets = [0, 16], sizes = [2, 16], strides = [1, 1]} : vector<2x48xf32> to vector<2x16xf32>
      %28 = vector.extract_strided_slice %18 {offsets = [0, 16], sizes = [2, 16], strides = [1, 1]} : vector<2x48xf32> to vector<2x16xf32>
      %29 = arith.addf %27, %28 : vector<2x16xf32>
      %30 = arith.negf %29 : vector<2x16xf32>
      %31 = math.exp %30 : vector<2x16xf32>
      %cst_20 = arith.constant 1.000000e+00 : f32
      %32 = vector.broadcast %cst_20 : f32 to vector<2x16xf32>
      %33 = arith.addf %32, %31 : vector<2x16xf32>
      %34 = arith.divf %32, %33 : vector<2x16xf32>
      %35 = vector.extract_strided_slice %15 {offsets = [0, 32], sizes = [2, 16], strides = [1, 1]} : vector<2x48xf32> to vector<2x16xf32>
      %36 = vector.extract_strided_slice %18 {offsets = [0, 32], sizes = [2, 16], strides = [1, 1]} : vector<2x48xf32> to vector<2x16xf32>
      %37 = arith.mulf %26, %36 : vector<2x16xf32>
      %38 = arith.addf %35, %37 : vector<2x16xf32>
      %39 = math.tanh %38 : vector<2x16xf32>
      %cst_21 = arith.constant 1.000000e+00 : f32
      %40 = vector.broadcast %cst_21 : f32 to vector<2x16xf32>
      %41 = arith.subf %40, %34 : vector<2x16xf32>
      %42 = arith.mulf %41, %39 : vector<2x16xf32>
      %43 = arith.mulf %34, %8 : vector<2x16xf32>
      %44 = arith.addf %42, %43 : vector<2x16xf32>
      %c7_i32 = arith.constant 7 : i32
      %45 = arith.subi %c7_i32, %arg14 : i32
      %46 = arith.index_cast %45 : i32 to index
      %c0_22 = arith.constant 0 : index
      %c0_23 = arith.constant 0 : index
      %47 = vector.load %arg1[%46, %c0_22, %c0_23] : memref<8x2x16xf32, #tpu.memory_space<vmem>>, vector<1x2x16xf32>
      %48 = vector.shape_cast %47 : vector<1x2x16xf32> to vector<2x16xf32>
      %c0_24 = arith.constant 0 : index
      %c0_25 = arith.constant 0 : index
      %49 = vector.load %arg13[%c0_24, %c0_25] : memref<2x16xf32, #tpu.memory_space<vmem>>, vector<2x16xf32>
      %c0_26 = arith.constant 0 : index
      %c0_27 = arith.constant 0 : index
      %50 = vector.load %arg6[%c0_26, %c0_27] : memref<16x48xf32, #tpu.memory_space<vmem>>, vector<16x48xf32>
      %c0_28 = arith.constant 0 : index
      %c0_29 = arith.constant 0 : index
      %51 = vector.load %arg7[%c0_28, %c0_29] : memref<1x48xf32, #tpu.memory_space<vmem>>, vector<1x48xf32>
      %c0_30 = arith.constant 0 : index
      %c0_31 = arith.constant 0 : index
      %52 = vector.load %arg8[%c0_30, %c0_31] : memref<16x48xf32, #tpu.memory_space<vmem>>, vector<16x48xf32>
      %c0_32 = arith.constant 0 : index
      %c0_33 = arith.constant 0 : index
      %53 = vector.load %arg9[%c0_32, %c0_33] : memref<1x48xf32, #tpu.memory_space<vmem>>, vector<1x48xf32>
      %cst_34 = arith.constant dense<0.000000e+00> : vector<2x48xf32>
      %54 = tpu.matmul %48, %50, %cst_34 {dimension_numbers = #tpu.dot_dimension_numbers<[1], [0], [0], [1], [0, 0, 1, 1], [], []>} : vector<2x16xf32>, vector<16x48xf32>, vector<2x48xf32> -> vector<2x48xf32>
      %55 = vector.broadcast %51 : vector<1x48xf32> to vector<2x48xf32>
      %56 = arith.addf %54, %55 : vector<2x48xf32>
      %cst_35 = arith.constant dense<0.000000e+00> : vector<2x48xf32>
      %57 = tpu.matmul %49, %52, %cst_35 {dimension_numbers = #tpu.dot_dimension_numbers<[1], [0], [0], [1], [0, 0, 1, 1], [], []>} : vector<2x16xf32>, vector<16x48xf32>, vector<2x48xf32> -> vector<2x48xf32>
      %58 = vector.broadcast %53 : vector<1x48xf32> to vector<2x48xf32>
      %59 = arith.addf %57, %58 : vector<2x48xf32>
      %60 = vector.extract_strided_slice %56 {offsets = [0, 0], sizes = [2, 16], strides = [1, 1]} : vector<2x48xf32> to vector<2x16xf32>
      %61 = vector.extract_strided_slice %59 {offsets = [0, 0], sizes = [2, 16], strides = [1, 1]} : vector<2x48xf32> to vector<2x16xf32>
      %62 = arith.addf %60, %61 : vector<2x16xf32>
      %63 = arith.negf %62 : vector<2x16xf32>
      %64 = math.exp %63 : vector<2x16xf32>
      %cst_36 = arith.constant 1.000000e+00 : f32
      %65 = vector.broadcast %cst_36 : f32 to vector<2x16xf32>
      %66 = arith.addf %65, %64 : vector<2x16xf32>
      %67 = arith.divf %65, %66 : vector<2x16xf32>
      %68 = vector.extract_strided_slice %56 {offsets = [0, 16], sizes = [2, 16], strides = [1, 1]} : vector<2x48xf32> to vector<2x16xf32>
      %69 = vector.extract_strided_slice %59 {offsets = [0, 16], sizes = [2, 16], strides = [1, 1]} : vector<2x48xf32> to vector<2x16xf32>
      %70 = arith.addf %68, %69 : vector<2x16xf32>
      %71 = arith.negf %70 : vector<2x16xf32>
      %72 = math.exp %71 : vector<2x16xf32>
      %cst_37 = arith.constant 1.000000e+00 : f32
      %73 = vector.broadcast %cst_37 : f32 to vector<2x16xf32>
      %74 = arith.addf %73, %72 : vector<2x16xf32>
      %75 = arith.divf %73, %74 : vector<2x16xf32>
      %76 = vector.extract_strided_slice %56 {offsets = [0, 32], sizes = [2, 16], strides = [1, 1]} : vector<2x48xf32> to vector<2x16xf32>
      %77 = vector.extract_strided_slice %59 {offsets = [0, 32], sizes = [2, 16], strides = [1, 1]} : vector<2x48xf32> to vector<2x16xf32>
      %78 = arith.mulf %67, %77 : vector<2x16xf32>
      %79 = arith.addf %76, %78 : vector<2x16xf32>
      %80 = math.tanh %79 : vector<2x16xf32>
      %cst_38 = arith.constant 1.000000e+00 : f32
      %81 = vector.broadcast %cst_38 : f32 to vector<2x16xf32>
      %82 = arith.subf %81, %75 : vector<2x16xf32>
      %83 = arith.mulf %82, %80 : vector<2x16xf32>
      %84 = arith.mulf %75, %49 : vector<2x16xf32>
      %85 = arith.addf %83, %84 : vector<2x16xf32>
      %c0_39 = arith.constant 0 : index
      %c0_40 = arith.constant 0 : index
      %86 = vector.load %arg12[%c0_39, %c0_40] : memref<2x16xf32, #tpu.memory_space<vmem>>, vector<2x16xf32>
      tpu.vector_store %arg12[%c0_39, %c0_40], %44 {strides = array<i32>} : memref<2x16xf32, #tpu.memory_space<vmem>>, vector<2x16xf32>,
      %c0_41 = arith.constant 0 : index
      %c0_42 = arith.constant 0 : index
      %87 = vector.load %arg13[%c0_41, %c0_42] : memref<2x16xf32, #tpu.memory_space<vmem>>, vector<2x16xf32>
      tpu.vector_store %arg13[%c0_41, %c0_42], %85 {strides = array<i32>} : memref<2x16xf32, #tpu.memory_space<vmem>>, vector<2x16xf32>,
      %88 = arith.index_cast %arg14 : i32 to index
      %c0_43 = arith.constant 0 : index
      %c0_44 = arith.constant 0 : index
      %89 = vector.load %arg10[%88, %c0_43, %c0_44] : memref<8x2x16xf32, #tpu.memory_space<vmem>>, vector<1x2x16xf32>
      %90 = vector.shape_cast %89 : vector<1x2x16xf32> to vector<2x16xf32>
      %91 = vector.shape_cast %44 : vector<2x16xf32> to vector<1x2x16xf32>
      tpu.vector_store %arg10[%88, %c0_43, %c0_44], %91 {strides = array<i32>} : memref<8x2x16xf32, #tpu.memory_space<vmem>>, vector<1x2x16xf32>,
      %c7_i32_45 = arith.constant 7 : i32
      %92 = arith.subi %c7_i32_45, %arg14 : i32
      %93 = arith.index_cast %92 : i32 to index
      %c0_46 = arith.constant 0 : index
      %c0_47 = arith.constant 0 : index
      %94 = vector.load %arg11[%93, %c0_46, %c0_47] : memref<8x2x16xf32, #tpu.memory_space<vmem>>, vector<1x2x16xf32>
      %95 = vector.shape_cast %94 : vector<1x2x16xf32> to vector<2x16xf32>
      %96 = vector.shape_cast %85 : vector<2x16xf32> to vector<1x2x16xf32>
      tpu.vector_store %arg11[%93, %c0_46, %c0_47], %96 {strides = array<i32>} : memref<8x2x16xf32, #tpu.memory_space<vmem>>, vector<1x2x16xf32>,
    }
    %c8_i32_4 = arith.constant 8 : i32
    return
  }
  func.func @transform_0(%arg0: i32) -> (i32, i32, i32) {
    %c0_i32 = arith.constant 0 : i32
    %c0_i32_0 = arith.constant 0 : i32
    %c0_i32_1 = arith.constant 0 : i32
    %c0_i32_2 = arith.constant 0 : i32
    return %c0_i32, %c0_i32_0, %c0_i32_1 : i32, i32, i32
  }
  func.func @transform_1(%arg0: i32) -> (i32, i32) {
    %c0_i32 = arith.constant 0 : i32
    %c0_i32_0 = arith.constant 0 : i32
    %c0_i32_1 = arith.constant 0 : i32
    return %c0_i32, %c0_i32_0 : i32, i32
  }
  func.func @transform_2(%arg0: i32) -> (i32, i32) {
    %c0_i32 = arith.constant 0 : i32
    %c0_i32_0 = arith.constant 0 : i32
    %c0_i32_1 = arith.constant 0 : i32
    return %c0_i32, %c0_i32_0 : i32, i32
  }
  func.func @transform_3(%arg0: i32) -> (i32, i32) {
    %c0_i32 = arith.constant 0 : i32
    %c0_i32_0 = arith.constant 0 : i32
    %c0_i32_1 = arith.constant 0 : i32
    return %c0_i32, %c0_i32_0 : i32, i32
  }
  func.func @transform_4(%arg0: i32) -> (i32, i32) {
    %c0_i32 = arith.constant 0 : i32
    %c0_i32_0 = arith.constant 0 : i32
    %c0_i32_1 = arith.constant 0 : i32
    return %c0_i32, %c0_i32_0 : i32, i32
  }
  func.func @transform_5(%arg0: i32) -> (i32, i32) {
    %c0_i32 = arith.constant 0 : i32
    %c0_i32_0 = arith.constant 0 : i32
    %c0_i32_1 = arith.constant 0 : i32
    return %c0_i32, %c0_i32_0 : i32, i32
  }
  func.func @transform_6(%arg0: i32) -> (i32, i32) {
    %c0_i32 = arith.constant 0 : i32
    %c0_i32_0 = arith.constant 0 : i32
    %c0_i32_1 = arith.constant 0 : i32
    return %c0_i32, %c0_i32_0 : i32, i32
  }
  func.func @transform_7(%arg0: i32) -> (i32, i32) {
    %c0_i32 = arith.constant 0 : i32
    %c0_i32_0 = arith.constant 0 : i32
    %c0_i32_1 = arith.constant 0 : i32
    return %c0_i32, %c0_i32_0 : i32, i32
  }
  func.func @transform_8(%arg0: i32) -> (i32, i32) {
    %c0_i32 = arith.constant 0 : i32
    %c0_i32_0 = arith.constant 0 : i32
    %c0_i32_1 = arith.constant 0 : i32
    return %c0_i32, %c0_i32_0 : i32, i32
  }
  func.func @transform_9(%arg0: i32) -> (i32, i32, i32) {
    %c0_i32 = arith.constant 0 : i32
    %c0_i32_0 = arith.constant 0 : i32
    %c0_i32_1 = arith.constant 0 : i32
    %c0_i32_2 = arith.constant 0 : i32
    return %c0_i32, %c0_i32_0, %c0_i32_1 : i32, i32, i32
  }
  func.func @transform_10(%arg0: i32) -> (i32, i32, i32) {
    %c0_i32 = arith.constant 0 : i32
    %c0_i32_0 = arith.constant 0 : i32
    %c0_i32_1 = arith.constant 0 : i32
    %c0_i32_2 = arith.constant 0 : i32
    return %c0_i32, %c0_i32_0, %c0_i32_1 : i32, i32, i32
  }
}

</mosaic_0001>

<bundles_post_ra>
// kernel: tpu_custom_call.1
= control target key start
LH: loop header
LB: loop body
LE: loop exit
PB: predicated region body
PF: predicated region fallthrough
CT: control target
= control target key end

     0   :  { %16 = vsyncpa [#allocation5], 0  ;;  %s794_s0 = inlined_call_operand.hbm [shape: f32[8,2,16], index: 0, kind: input, shape index: {}]   ;;  %s795_s1 = inlined_call_operand.hbm [shape: f32[16,48], index: 1, kind: input, shape index: {}]   ;;  %s796_s2 = inlined_call_operand.vmem [shape: f32[1,48], index: 2, kind: input, shape index: {}]   ;;  %s797_s3 = inlined_call_operand.hbm [shape: f32[16,48], index: 3, kind: input, shape index: {}]   ;;  %s798_s4 = inlined_call_operand.vmem [shape: f32[1,48], index: 4, kind: input, shape index: {}]   ;;  %s799_s5 = inlined_call_operand.hbm [shape: f32[16,48], index: 5, kind: input, shape index: {}]   ;;  %s800_s6 = inlined_call_operand.vmem [shape: f32[1,48], index: 6, kind: input, shape index: {}]   ;;  %s801_s7 = inlined_call_operand.hbm [shape: f32[16,48], index: 7, kind: input, shape index: {}]   ;;  %s802_s8 = inlined_call_operand.vmem [shape: f32[1,48], index: 8, kind: input, shape index: {}]   ;;  %s803_s9 = inlined_call_operand.hbm [shape: f32[8,2,16], index: 9, kind: output, shape index: {0}]   ;;  %s804_s10 = inlined_call_operand.hbm [shape: f32[8,2,16], index: 10, kind: output, shape index: {1}]  }
   0x1   :  { %17 = vsyncpa [#allocation8], 0 }
   0x2   :  { %18 = vsyncpa [#allocation11], 0 }
   0x3   :  { %19 = vsyncpa [#allocation6], 0  ;;  %s38_s15 = sshll.u32 %s795_s1, 4  ;;  %s39_s15 = int_to_ptr.hbm [resolvable:$true] %s38_s15 }
   0x4   :  { %20 = vsyncpa [#allocation15], 0  ;;  %s633_s16 = smov [#allocation7]   ;;  %s68_s20 = sshll.u32 %s799_s5, 4  ;;  %s69_s20 = int_to_ptr.hbm [resolvable:$true] %s68_s20 }
   0x5   :  { %s40_s17 = sshll.u32 %s633_s16, 4  ;;  %s634_s21 = smov 128   ;;  %s41_s17 = int_to_ptr.vmem [resolvable:$true] %s40_s17 }
   0x6   :  { %s635_s22 = smov 8   ;;  %s636_s23 = smov [#allocation10]  }
   0x7   :  { %46 = dma.hbm_to_vmem [thread:$0]  %s39_s15, 256, %s41_s17, [#allocation8], %s634_s21, %s634_s21, %s635_s22  }
   0x8   :  { %s70_s24 = sshll.u32 %s636_s23, 4  ;;  %s25_s26 = sshll.u32 %s794_s0, 4  ;;  %s71_s24 = int_to_ptr.vmem [resolvable:$true] %s70_s24  ;;  %s26_s26 = int_to_ptr.hbm [resolvable:$true] %s25_s26 }
   0x9   :  { %76 = dma.hbm_to_vmem [thread:$0]  %s69_s20, 256, %s71_s24, [#allocation11], %s634_s21, %s634_s21, %s635_s22  }
   0xa   :  { %s637_s5 = smov [#allocation4]   ;;  %s53_s30 = sshll.u32 %s797_s3, 4  ;;  %s54_s30 = int_to_ptr.hbm [resolvable:$true] %s53_s30 }
   0xb   :  { %s27_s27 = sshll.u32 %s637_s5, 4  ;;  %s638_s11 = smov 32   ;;  %s28_s27 = int_to_ptr.vmem [resolvable:$true] %s27_s27 }
   0xc   :  { %s639_s12 = smov 2   ;;  %s640_s0 = smov [#allocation9]  }
   0xd   :  { %33 = dma.hbm_to_vmem [thread:$0]  %s26_s26, 256, %s28_s27, [#allocation5], %s638_s11, %s638_s11, %s639_s12  }
   0xe   :  { %s55_s13 = sshll.u32 %s640_s0, 4  ;;  %s83_s16 = sshll.u32 %s801_s7, 4  ;;  %s56_s13 = int_to_ptr.vmem [resolvable:$true] %s55_s13  ;;  %s84_s16 = int_to_ptr.hbm [resolvable:$true] %s83_s16 }
   0xf   :  { %61 = dma.hbm_to_vmem [thread:$0]  %s54_s30, 256, %s56_s13, [#allocation8], %s634_s21, %s634_s21, %s635_s22  }
  0x10   :  { %s641_s3 = smov [#allocation12]  }
  0x11   :  { %s85_s17 = sshll.u32 %s641_s3, 4  ;;  %s86_s17 = int_to_ptr.vmem [resolvable:$true] %s85_s17 }
  0x12   :  { %91 = dma.hbm_to_vmem [thread:$0]  %s84_s16, 256, %s86_s17, [#allocation11], %s634_s21, %s634_s21, %s635_s22  }
  0x13   :  { %619 = dma.done.wait [#allocation5], 256  }
  0x14   :  { %620 = vsyncadd [#allocation5], 4294967040 }
  0x15   :  { %621 = dma.done.wait [#allocation8], 512  }
  0x16   :  { %622 = vsyncadd [#allocation8], 4294966784 }
  0x17   :  { %623 = dma.done.wait [#allocation11], 512  }
  0x18   :  { %624 = vsyncadd [#allocation11], 4294966784  ;;  %vm114_vm0 = vcmask 123904   ;;  %v642_v0 = vmov 0.0   ;;  %s736_s7 = smov 0  }
  0x19   :  { %115 = vst.msk [vmem:[#allocation2] sm:$0x3] %vm114_vm0, %v642_v0 }
  0x1a   :  { %116 = vst.msk [vmem:[#allocation3] sm:$0x3] %vm114_vm0, %v642_v0 }
  0x1b LB: > { %v131_v1 = vld [vmem:[#allocation9 + $0x8] sm:$0xff]  ;;  %v128_v2 = vld [vmem:[#allocation7 + $0x8] sm:$0xff]  ;;  %v130_v3 = vld [vmem:[#allocation9] sm:$0xff]  ;;  %vm136_vm1 = vcmask 130048   ;;  %s399_s18 = sshll.u32 %s631_s7, 1  ;;  %s228_s19 = ssub.s32 7, %s631_s7  ;;  %s631_s7 = sphi %s736_s7, %s122_s7  }
  0x1c   : > { %180 = vmatpush.msra.mxu1 %v131_v1  ;;  %154 = vmatpush.msra.mxu0 %v128_v2  ;;  %v234_v4 = vld [vmem:[#allocation10 + $0x8] sm:$0xff]  ;;  %v237_v5 = vld [vmem:[#allocation12 + $0x8] sm:$0xff]  ;;  %v127_v6 = vld [vmem:[#allocation7] sm:$0xff]  ;;  %s745_s20 = sshll.u32 %s228_s19, 1  ;;  %s124_s21 = scalar_lea.vmem [#allocation4], %s399_s18 }
  0x1d   : > { %259 = vmatpush.msra.mxu2 %v234_v4  ;;  %285 = vmatpush.msra.mxu3 %v237_v5  ;;  %v233_v8 = vld [vmem:[#allocation10] sm:$0xff]  ;;  %v236_v9 = vld [vmem:[#allocation12] sm:$0xff]  ;;  %v125_v11 = vld [vmem:[%s124_s21] sm:$0x3]  ;;  %s230_s22 = scalar_lea.vmem [#allocation4], %s745_s20  ;;  %s643_s25 = smov 96  }
  0x1e   : > { %181 = vmatpush.msra.mxu1 %v130_v3  ;;  %155 = vmatpush.msra.mxu0 %v127_v6  ;;  %v231_v12 = vld [vmem:[%s230_s22] sm:$0x3]  ;;  %s644_s30 = smov 32   ;;  %s645_s0 = smov 16  }
  0x1f   : > { %260 = vmatpush.msra.mxu2 %v233_v8  ;;  %400 = vmatmul.msk.f32.vlgmr.msra.gmra.mxu0 %vm136_vm1, %v125_v11  ;;  %v431_v13 = vld [vmem:[%s798_s4] ss:$0 sm:$0xff]  ;;  %s646_s13 = smov 112   ;;  %s343_s14 = scalar_lea.vmem [#allocation13], %s399_s18 }
  0x20   : > { %v741_v7 = vld [vmem:[#allocation2] sm:$0x3]  ;;  %286 = vmatpush.msra.mxu3 %v236_v9  ;;  %404 = vmatmul.msk.f32.vlgmr.msra.gmra.mxu2 %vm136_vm1, %v231_v12  ;;  %s345_s15 = scalar_lea.vmem [#allocation14], %s745_s20  ;;  %s122_s7 = sadd.s32 1, %s631_s7  }
  0x21   : > { %v747_v10 = vld [vmem:[#allocation3] sm:$0x3]  ;;  %401 = vmatmul.msk.f32.vlgmr.msra.gmra.mxu1 %vm136_vm1, %v741_v7  ;;  %v434_v16 = vld [vmem:[%s802_s8] ss:$0 sm:$0xff]  ;;  %p119_p0 = scmp.ge.s32.totalorder %s122_s7, 8  }
  0x22   : > { %405 = vmatmul.msk.f32.vlgmr.msra.gmra.mxu3 %vm136_vm1, %v747_v10  ;;  %v432_v19 = vld [vmem:[%s796_s2] ss:$0 sm:$0xff]  ;;  %s353_s17 = sshll.u32 (%p119_p0), %s803_s9, 4  ;;  %s647_s19 = smov (%p119_p0), [#allocation13]   ;;  %s354_s17 = int_to_ptr.hbm [resolvable:$true] %s353_s17 }
  0x23   : > { %v433_v23 = vld [vmem:[%s800_s6] ss:$0 sm:$0xff]  ;;  %s351_s18 = sshll.u32 (%p119_p0), %s647_s19, 4  ;;  %s648_s20 = smov (%p119_p0), [#allocation14]   ;;  %s352_s18 = int_to_ptr.vmem [resolvable:$true] %s351_s18 }
  0x24   :  { %s364_s21 = sshll.u32 (%p119_p0), %s648_s20, 4  ;;  %s366_s24 = sshll.u32 (%p119_p0), %s804_s10, 4  ;;  %s365_s21 = int_to_ptr.vmem [resolvable:$true] %s364_s21  ;;  %s367_s24 = int_to_ptr.hbm [resolvable:$true] %s366_s24 }
  0x9c   : > { %v157_v20 = vpop.f32.mrf.mxu0 }
  0x9d   : > { %v158_v21 = vadd.f32 %v432_v19, %v157_v20 }
  0x9e   : > { %v183_v14 = vpop.f32.mrf.mxu1 }
  0x9f   : > { %v184_v15 = vadd.f32 %v431_v13, %v183_v14 }
  0xa1   : > { %207 = vrot.lane.b32.xlu0 %v184_v15, %s643_s25  ;;  %v186_v22 = vadd.f32 %v184_v15, %v158_v21 }
  0xa3   : > { %v262_v24 = vpop.f32.mrf.mxu2  ;;  %v402_v25 = vmul.f32 -1.442695, %v186_v22 }
  0xa4   : > { %v263_v26 = vadd.f32 %v433_v23, %v262_v24 }
  0xa5   : > { %v288_v17 = vpop.f32.mrf.mxu3  ;;  %435 = vpow2.f32 %v402_v25 }
  0xa6   : > { %v289_v18 = vadd.f32 %v434_v16, %v288_v17 }
  0xa8   : > { %v291_v27 = vadd.f32 %v289_v18, %v263_v26 }
  0xa9   : > { %312 = vrot.lane.b32.xlu0 %v289_v18, %s643_s25 }
  0xaa   : > { %v406_v28 = vmul.f32 -1.442695, %v291_v27 }
  0xab   : > { %v436_v29 = vpop.eup %435 }
  0xac   : > { %437 = vpow2.f32 %v406_v28  ;;  %v190_v30 = vadd.f32 1.0, %v436_v29 }
  0xae   : > { %439 = vrcp.f32 %v190_v30  ;;  %v202_v41 = vand.u32 2147483648, %v190_v30  ;;  %vm196_vm3 = vweird.f32 %v190_v30  ;;  %v200_v42 = vand.u32 2147483647, %v190_v30 }
  0xb0   : > { %v203_v45 = vor.u32 1.1754944e-38, %v202_v41  ;;  %vm201_vm5 = vcmp.eq.f32.partialorder %v200_v42, 8.507059e+37 }
  0xb2   : > { %v438_v31 = vpop.eup %437 }
  0xb3   : > { %v295_v32 = vadd.f32 1.0, %v438_v31 }
  0xb4   : > { %v440_v33 = vpop.eup %439 }
  0xb5   : > { %441 = vrcp.f32 %v295_v32  ;;  %v192_v34 = vmul.f32 %v440_v33, %v190_v30  ;;  %vm197_vm2 = vweird.f32 %v440_v33  ;;  %v307_v50 = vand.u32 2147483648, %v295_v32 }
  0xb6   : > { %vm198_vm4 = vmor %vm196_vm3, %vm197_vm2  ;;  %vm301_vm7 = vweird.f32 %v295_v32  ;;  %v305_v51 = vand.u32 2147483647, %v295_v32 }
  0xb7   : > { %v193_v35 = vsub.f32 1.0, %v192_v34  ;;  %v308_v53 = vor.u32 1.1754944e-38, %v307_v50 }
  0xb8   : > { %vm306_vm9 = vcmp.eq.f32.partialorder %v305_v51, 8.507059e+37 }
  0xb9   : > { %v194_v37 = vmul.f32 %v440_v33, %v193_v35 }
  0xbb   : > { %v442_v36 = vpop.eup %441  ;;  %v195_v39 = vadd.f32 %v440_v33, %v194_v37 }
  0xbc   : > { %v297_v38 = vmul.f32 %v442_v36, %v295_v32  ;;  %vm302_vm6 = vweird.f32 %v442_v36 }
  0xbd   : > { %v199_v43 = vsel %vm198_vm4, %v440_v33, %v195_v39  ;;  %vm303_vm8 = vmor %vm301_vm7, %vm302_vm6 }
  0xbe   : > { %v298_v40 = vsub.f32 1.0, %v297_v38  ;;  %v204_v47 = vsel %vm201_vm5, %v203_v45, %v199_v43 }
  0xbf   : > { %v217_v0 = vsub.f32 1.0, %v204_v47 }
  0xc0   : > { %v299_v44 = vmul.f32 %v442_v36, %v298_v40 }
  0xc2   : > { %v300_v49 = vadd.f32 %v442_v36, %v299_v44 }
  0xc4   : > { %v304_v52 = vsel %vm303_vm8, %v442_v36, %v300_v49 }
  0xc5   : > { %v309_v55 = vsel %vm306_vm9, %v308_v53, %v304_v52 }
  0xc6   : > { %v322_v6 = vsub.f32 1.0, %v309_v55 }
 0x113   : > { %v208_v46 = vpop.permute.xlu0 %207 }
 0x114   : > { %v210_v48 = vmul.f32 %v208_v46, %v204_v47 }
 0x116   : > { %212 = vrot.lane.b32.xlu1 %v210_v48, %s644_s30 }
 0x11b   : > { %v313_v54 = vpop.permute.xlu0 %312 }
 0x11c   : > { %v315_v56 = vmul.f32 %v313_v54, %v309_v55 }
 0x11e   : > { %317 = vrot.lane.b32.xlu1 %v315_v56, %s644_s30 }
 0x126   : > { %328 = vrot.lane.b32.xlu1 %v747_v10, %s645_s0 }
 0x188   : > { %v213_v57 = vpop.permute.xlu1 %212 }
 0x189   : > { %v215_v58 = vadd.f32 %v213_v57, %v158_v21 }
 0x18b   : > { %443 = vtanh.f32 %v215_v58 }
 0x190   : > { %v318_v59 = vpop.permute.xlu1 %317 }
 0x191   : > { %v444_v60 = vpop.eup %443  ;;  %v320_v61 = vadd.f32 %v318_v59, %v263_v26 }
 0x192   : > { %219 = vrot.lane.b32.xlu2 %v444_v60, %s646_s13 }
 0x193   : > { %445 = vtanh.f32 %v320_v61 }
 0x198   : > { %v329_v5 = vpop.permute.xlu1 %328 }
 0x199   : > { %v446_v62 = vpop.eup %445  ;;  %v331_v9 = vmul.f32 %v329_v5, %v309_v55 }
 0x19a   : > { %223 = vrot.lane.b32.xlu2 %v741_v7, %s645_s0  ;;  %324 = vrot.lane.b32.xlu0 %v446_v62, %s646_s13 }
 0x1ec   : > { %v220_v63 = vpop.permute.xlu2 %219 }
 0x1ed   : > { %v222_v2 = vmul.f32 %v220_v63, %v217_v0 }
 0x1f4   : > { %v224_v1 = vpop.permute.xlu2 %223 }
 0x1f5   : > { %v226_v3 = vmul.f32 %v224_v1, %v204_v47 }
 0x1f7   : > { %v227_v4 = vadd.f32 %v226_v3, %v222_v2 }
 0x1f9   : > { %334 = vrot.lane.b32.xlu2 %v227_v4, %s646_s13 }
 0x20c   : > { %v325_v8 = vpop.permute.xlu0 %324 }
 0x20d   : > { %v327_v10 = vmul.f32 %v325_v8, %v322_v6 }
 0x20f   : > { %v332_v11 = vadd.f32 %v331_v9, %v327_v10 }
 0x211   : > { %339 = vrot.lane.b32.xlu0 %v332_v11, %s646_s13 }
 0x253   : > { %v335_v12 = vpop.permute.xlu2 %334 }
 0x254   : > { %337 = vst.msk [vmem:[#allocation2] sm:$0x3] %vm114_vm0, %v335_v12 }
 0x255   : > { %344 = vst.msk [vmem:[%s343_s14] sm:$0x3] %vm114_vm0, %v335_v12 }
 0x256   :  { %359 = dma.vmem_to_hbm [thread:$0]  (%p119_p0), %s352_s18, 256, %s354_s17, [#allocation6], %s638_s11, %s638_s11, %s639_s12  }
 0x281   :  { %121 = sbr.rel (!%p119_p0) target bundleno = 27 (0x1b), region = 95 }
 0x283   : > { %v340_v7 = vpop.permute.xlu0 %339 }
 0x284   : > { %342 = vst.msk [vmem:[#allocation3] sm:$0x3] %vm114_vm0, %v340_v7 }
 0x285   : > { %346 = vst.msk [vmem:[%s345_s15] sm:$0x3] %vm114_vm0, %v340_v7 }
 0x286   :  { %372 = dma.vmem_to_hbm [thread:$0]  %s365_s21, 256, %s367_s24, [#allocation15], %s638_s11, %s638_s11, %s639_s12  }
 0x287   :  { %625 = dma.done.wait [#allocation6], 256  }
 0x288   :  { %626 = vsyncadd [#allocation6], 4294967040 }
 0x289   :  { %627 = dma.done.wait [#allocation15], 256  }
 0x28a   :  { %628 = vsyncadd [#allocation15], 4294967040 }
 0x28b   :  { %381 = vsyncpa [#allocation5], 1 }
 0x28c   :  { %382 = vsyncpa [#allocation8], 1 }
 0x28d   :  { %383 = vsyncpa [#allocation11], 1 }
 0x28e   :  { %384 = vsyncpa [#allocation6], 1 }
 0x28f   :  { %385 = vsyncpa [#allocation15], 1 }

</bundles_post_ra>
